<compile_context>
chip_gen: v5e
topology: v5e:2x2
jax: 0.10.0
libtpu: 0.0.40
codegen_flags: <defaults>
</compile_context>

<pallas_src>
import jax
import jax.numpy as jnp
from jax import lax
from jax.experimental import pallas as pl
from jax.experimental.pallas import tpu as pltpu


def _round_up(x, m):
    return (x + m - 1) // m * m


def _make_kernel(n_layers, C, L, L_pad, halo):
    """Builds the kernel closure over static shapes (everything unrolled/static)."""

    def kernel(x_ref, wg_ref, bg_ref, wk_ref, bk_ref, skips_ref, xbuf_ref):
        f32 = jnp.float32
        bf16 = jnp.bfloat16

        # Zero only the two halo strips (they are never written afterwards); the
        # 128-aligned center slab is fully overwritten just below.
        xbuf_ref[:, 0:halo] = jnp.zeros((C, halo), f32)
        xbuf_ref[:, halo + L_pad:] = jnp.zeros((C, halo), f32)
        xbuf_ref[:, halo:halo + L_pad] = x_ref[0].astype(f32)

        if L_pad != L:
            # Keeps the padded tail of the running activation exactly zero so the
            # +d taps of later layers still read conv "same" zero padding.
            valid = (lax.broadcasted_iota(jnp.int32, (1, L_pad), 1) < L).astype(f32)

        for i in range(n_layers):            # static unroll, static dilations/offsets
            d = 1 << i
            x_c = xbuf_ref[:, halo:halo + L_pad]             # (C, L_pad) f32, aligned
            x_m = xbuf_ref[:, halo - d:halo - d + L_pad]     # x[:, l - d] (zero halo)
            x_p = xbuf_ref[:, halo + d:halo + d + L_pad]     # x[:, l + d] (zero halo)

            # Three full-length MXU matmuls: bf16 operands, f32 accumulation.
            gates = (jnp.dot(wg_ref[i, 0], x_m.astype(bf16),
                             preferred_element_type=f32)
                     + jnp.dot(wg_ref[i, 1], x_c.astype(bf16),
                               preferred_element_type=f32)
                     + jnp.dot(wg_ref[i, 2], x_p.astype(bf16),
                               preferred_element_type=f32)
                     + bg_ref[i])                            # (2C, L_pad) f32

            # sigmoid(s) = 0.5*(1 + tanh(0.5*s)): one EUP push instead of exp+recip.
            g = jnp.tanh(gates[:C, :]) * (0.5 + 0.5 * jnp.tanh(0.5 * gates[C:, :]))

            y = jnp.dot(wk_ref[i], g.astype(bf16),
                        preferred_element_type=f32) + bk_ref[i]   # (C, L_pad) f32
            if L_pad != L:
                y = y * valid

            new_x = x_c + y                                  # residual add (f32)
            xbuf_ref[:, halo:halo + L_pad] = new_x           # state lives in VMEM
            # PyTorch's in-place `skip = x; x += residual` => skip aliases the
            # post-residual activation.
            skips_ref[i, 0] = new_x.astype(skips_ref.dtype)

    return kernel


@jax.jit
def wavenet_block(x, params):
    """x: (B, C, L) float32. Returns (out (B, C, L), skips (n_layers, B, C, L))."""
    B, C, L = x.shape
    n_layers = params["w_tanh"].shape[0]
    d_max = 1 << (n_layers - 1)
    L_pad = _round_up(L, 128)
    halo = _round_up(d_max, 128)

    # Weight repack (inside the same jit as the pallas_call so XLA fuses it):
    # w_gate[i, k] = [[W_tanh[i,:,:,k]], [W_sig[i,:,:,k]]] -> (nl, 3, 2C, C), bf16.
    w_gate = jnp.transpose(
        jnp.concatenate([params["w_tanh"], params["w_sig"]], axis=1),
        (0, 3, 1, 2)).astype(jnp.bfloat16)                              # (nl, 3, 2C, C)
    b_gate = jnp.concatenate([params["b_tanh"], params["b_sig"]],
                             axis=1)[..., None].astype(jnp.float32)     # (nl, 2C, 1)
    w_skip = params["w_skip"][..., 0].astype(jnp.bfloat16)              # (nl, C, C)
    b_skip = params["b_skip"][..., None].astype(jnp.float32)            # (nl, C, 1)

    x_pad = x.astype(jnp.float32)
    if L_pad != L:
        x_pad = jnp.pad(x_pad, ((0, 0), (0, 0), (0, L_pad - L)))

    # VMEM budget from the actual buffers (2x for double-buffered in/out blocks).
    in_blk = C * L_pad * 4
    out_blk = n_layers * C * L_pad * 4
    w_bytes = (w_gate.size * 2 + b_gate.size * 4 + w_skip.size * 2 + b_skip.size * 4)
    scratch_bytes = C * (L_pad + 2 * halo) * 4
    vmem_needed = 2 * in_blk + 2 * out_blk + 2 * w_bytes + scratch_bytes
    vmem_limit = max(4 << 20, min(int(1.5 * vmem_needed) + (1 << 20), 64 << 20))

    flops = int(2 * B * n_layers * L_pad * C * C * 7)     # 3 gate taps (2C wide) + 1x1 skip
    transcendentals = int(2 * B * n_layers * C * L_pad)   # 2 tanh per element
    bytes_accessed = int(x_pad.size * 4 + n_layers * B * C * L_pad * 4 + w_bytes)

    kernel = _make_kernel(n_layers, C, L, L_pad, halo)

    grid_spec = pltpu.PrefetchScalarGridSpec(
        num_scalar_prefetch=0,
        grid=(B,),
        in_specs=[
            pl.BlockSpec((1, C, L_pad), lambda b: (b, 0, 0)),
            pl.BlockSpec((n_layers, 3, 2 * C, C), lambda b: (0, 0, 0, 0)),
            pl.BlockSpec((n_layers, 2 * C, 1), lambda b: (0, 0, 0)),
            pl.BlockSpec((n_layers, C, C), lambda b: (0, 0, 0)),
            pl.BlockSpec((n_layers, C, 1), lambda b: (0, 0, 0)),
        ],
        out_specs=pl.BlockSpec((n_layers, 1, C, L_pad), lambda b: (0, b, 0, 0)),
        scratch_shapes=[pltpu.VMEM((C, L_pad + 2 * halo), jnp.float32)],
    )

    skips = pl.pallas_call(
        kernel,
        out_shape=jax.ShapeDtypeStruct((n_layers, B, C, L_pad), jnp.float32),
        grid_spec=grid_spec,
        compiler_params=pltpu.CompilerParams(
            dimension_semantics=("parallel",),          # batch is fully independent
            vmem_limit_bytes=vmem_limit,
        ),
        cost_estimate=pl.CostEstimate(flops=flops,
                                      transcendentals=transcendentals,
                                      bytes_accessed=bytes_accessed),
    )(x_pad, w_gate, b_gate, w_skip, b_skip)

    skips = skips[..., :L]
    out = skips[-1]          # PyTorch aliasing: block output == last layer's skip
    return out, skips


def wavenet_block_ref(x, params):
    """Pure-JAX reference mirroring the PyTorch WaveNetBlock forward."""
    n_layers = params["w_tanh"].shape[0]
    dn = ("NCH", "OIH", "NCH")
    hi = lax.Precision.HIGHEST
    skips = []
    for i in range(n_layers):
        d = 2 ** i
        t = lax.conv_general_dilated(x, params["w_tanh"][i], (1,), [(d, d)],
                                     rhs_dilation=(d,), dimension_numbers=dn,
                                     precision=hi) + params["b_tanh"][i][None, :, None]
        s = lax.conv_general_dilated(x, params["w_sig"][i], (1,), [(d, d)],
                                     rhs_dilation=(d,), dimension_numbers=dn,
                                     precision=hi) + params["b_sig"][i][None, :, None]
        g = jnp.tanh(t) * jax.nn.sigmoid(s)
        y = lax.conv_general_dilated(g, params["w_skip"][i], (1,), [(0, 0)],
                                     dimension_numbers=dn,
                                     precision=hi) + params["b_skip"][i][None, :, None]
        x = x + y
        skips.append(x)   # matches PyTorch's in-place `x += residual` aliasing
    return x, jnp.stack(skips, axis=0)


def init_params(key, C, n_layers):
    """Deterministic synthetic params with PyTorch Conv1d shapes / init scale."""
    keys = jax.random.split(key, 6)
    k3 = 1.0 / (C * 3) ** 0.5
    k1 = 1.0 / (C * 1) ** 0.5
    u = lambda kk, shape, s: jax.random.uniform(kk, shape, jnp.float32, -s, s)
    return {
        "w_tanh": u(keys[0], (n_layers, C, C, 3), k3),
        "b_tanh": u(keys[1], (n_layers, C), k3),
        "w_sig":  u(keys[2], (n_layers, C, C, 3), k3),
        "b_sig":  u(keys[3], (n_layers, C), k3),
        "w_skip": u(keys[4], (n_layers, C, C, 1), k1),
        "b_skip": u(keys[5], (n_layers, C), k1),
    }


if __name__ == "__main__":
    key = jax.random.PRNGKey(0)
    kx, kp = jax.random.split(key)

    B, C, L = 2, 4, 16            # batch, channels (in == out), length (NCL)
    block_size = 3                # dilations 1, 2, 4
    x = jax.random.normal(kx, (B, C, L), jnp.float32)
    params = init_params(kp, C, block_size)

    out, skips = wavenet_block(x, params)
    out = jax.block_until_ready(out)
    skips = jax.block_until_ready(skips)

    out_ref, skips_ref_arr = wavenet_block_ref(x, params)
    assert out.shape == (B, C, L), out.shape
    assert skips.shape == (block_size, B, C, L), skips.shape
    # Tolerance sized for bf16 MXU operands with f32 accumulation.
    assert jnp.allclose(out, out_ref, atol=2e-2, rtol=2e-2), \
        float(jnp.abs(out - out_ref).max())
    assert jnp.allclose(skips, skips_ref_arr, atol=2e-2, rtol=2e-2), \
        float(jnp.abs(skips - skips_ref_arr).max())
    print("KERNEL_OK")
</pallas_src>

<mosaic_0001>
module attributes {stable_mosaic.version = 11 : i64} {
  func.func @kernel(%arg0: i32, %arg1: memref<1x4x128xf32, #tpu.memory_space<vmem>>, %arg2: memref<3x3x8x4xbf16, #tpu.memory_space<vmem>>, %arg3: memref<3x8x1xf32, #tpu.memory_space<vmem>>, %arg4: memref<3x4x4xbf16, #tpu.memory_space<vmem>>, %arg5: memref<3x4x1xf32, #tpu.memory_space<vmem>>, %arg6: memref<3x1x4x128xf32, #tpu.memory_space<vmem>>, %arg7: memref<4x384xf32, #tpu.memory_space<vmem>>) attributes {dimension_semantics = [#tpu.dimension_semantics<parallel>], iteration_bounds = array<i64: 2>, scalar_prefetch = 0 : i64, scratch_operands = 1 : i64, tpu.core_type = #tpu.core_type<tc>, window_params = [{transform_indices = @transform_0, window_bounds = array<i64: 1, 4, 128>}, {pipeline_mode = #tpu.pipeline_mode<synchronous>, transform_indices = @transform_1, window_bounds = array<i64: 3, 3, 8, 4>}, {pipeline_mode = #tpu.pipeline_mode<synchronous>, transform_indices = @transform_2, window_bounds = array<i64: 3, 8, 1>}, {pipeline_mode = #tpu.pipeline_mode<synchronous>, transform_indices = @transform_3, window_bounds = array<i64: 3, 4, 4>}, {pipeline_mode = #tpu.pipeline_mode<synchronous>, transform_indices = @transform_4, window_bounds = array<i64: 3, 4, 1>}, {transform_indices = @transform_5, window_bounds = array<i64: 3, 1, 4, 128>}]} {
    %cst = arith.constant 0.000000e+00 : f32
    %0 = vector.broadcast %cst : f32 to vector<4x128xf32>
    %c0 = arith.constant 0 : index
    %c0_0 = arith.constant 0 : index
    %1 = vector.load %arg7[%c0, %c0_0] : memref<4x384xf32, #tpu.memory_space<vmem>>, vector<4x128xf32>
    tpu.vector_store %arg7[%c0, %c0_0], %0 {strides = array<i32>} : memref<4x384xf32, #tpu.memory_space<vmem>>, vector<4x128xf32>,
    %cst_1 = arith.constant 0.000000e+00 : f32
    %2 = vector.broadcast %cst_1 : f32 to vector<4x128xf32>
    %c0_2 = arith.constant 0 : index
    %c256 = arith.constant 256 : index
    %3 = vector.load %arg7[%c0_2, %c256] : memref<4x384xf32, #tpu.memory_space<vmem>>, vector<4x128xf32>
    tpu.vector_store %arg7[%c0_2, %c256], %2 {strides = array<i32>} : memref<4x384xf32, #tpu.memory_space<vmem>>, vector<4x128xf32>,
    %c0_3 = arith.constant 0 : index
    %c0_4 = arith.constant 0 : index
    %c0_5 = arith.constant 0 : index
    %4 = vector.load %arg1[%c0_3, %c0_4, %c0_5] : memref<1x4x128xf32, #tpu.memory_space<vmem>>, vector<1x4x128xf32>
    %5 = vector.shape_cast %4 : vector<1x4x128xf32> to vector<4x128xf32>
    %c0_6 = arith.constant 0 : index
    %c128 = arith.constant 128 : index
    %6 = vector.load %arg7[%c0_6, %c128] : memref<4x384xf32, #tpu.memory_space<vmem>>, vector<4x128xf32>
    tpu.vector_store %arg7[%c0_6, %c128], %5 {strides = array<i32>} : memref<4x384xf32, #tpu.memory_space<vmem>>, vector<4x128xf32>,
    %7 = tpu.iota {dimensions = array<i32: 1>} : vector<1x128xi32>
    %c16_i32 = arith.constant 16 : i32
    %8 = vector.broadcast %c16_i32 : i32 to vector<1x128xi32>
    %9 = arith.cmpi slt, %7, %8 : vector<1x128xi32>
    %10 = arith.extui %9 : vector<1x128xi1> to vector<1x128xi32>
    %11 = arith.sitofp %10 : vector<1x128xi32> to vector<1x128xf32>
    %c0_7 = arith.constant 0 : index
    %c128_8 = arith.constant 128 : index
    %12 = vector.load %arg7[%c0_7, %c128_8] : memref<4x384xf32, #tpu.memory_space<vmem>>, vector<4x128xf32>
    %c0_9 = arith.constant 0 : index
    %c127 = arith.constant 127 : index
    %13 = vector.load %arg7[%c0_9, %c127] : memref<4x384xf32, #tpu.memory_space<vmem>>, vector<4x128xf32>
    %c0_10 = arith.constant 0 : index
    %c129 = arith.constant 129 : index
    %14 = vector.load %arg7[%c0_10, %c129] : memref<4x384xf32, #tpu.memory_space<vmem>>, vector<4x128xf32>
    %c0_11 = arith.constant 0 : index
    %c0_12 = arith.constant 0 : index
    %c0_13 = arith.constant 0 : index
    %c0_14 = arith.constant 0 : index
    %15 = vector.load %arg2[%c0_11, %c0_12, %c0_13, %c0_14] : memref<3x3x8x4xbf16, #tpu.memory_space<vmem>>, vector<1x1x8x4xbf16>
    %16 = vector.shape_cast %15 : vector<1x1x8x4xbf16> to vector<8x4xbf16>
    %17 = arith.truncf %13 : vector<4x128xf32> to vector<4x128xbf16>
    %cst_15 = arith.constant dense<0.000000e+00> : vector<8x128xf32>
    %18 = tpu.matmul %16, %17, %cst_15 {dimension_numbers = #tpu.dot_dimension_numbers<[1], [0], [0], [1], [0, 0, 1, 1], [], []>} : vector<8x4xbf16>, vector<4x128xbf16>, vector<8x128xf32> -> vector<8x128xf32>
    %c0_16 = arith.constant 0 : index
    %c1 = arith.constant 1 : index
    %c0_17 = arith.constant 0 : index
    %c0_18 = arith.constant 0 : index
    %19 = vector.load %arg2[%c0_16, %c1, %c0_17, %c0_18] : memref<3x3x8x4xbf16, #tpu.memory_space<vmem>>, vector<1x1x8x4xbf16>
    %20 = vector.shape_cast %19 : vector<1x1x8x4xbf16> to vector<8x4xbf16>
    %21 = arith.truncf %12 : vector<4x128xf32> to vector<4x128xbf16>
    %cst_19 = arith.constant dense<0.000000e+00> : vector<8x128xf32>
    %22 = tpu.matmul %20, %21, %cst_19 {dimension_numbers = #tpu.dot_dimension_numbers<[1], [0], [0], [1], [0, 0, 1, 1], [], []>} : vector<8x4xbf16>, vector<4x128xbf16>, vector<8x128xf32> -> vector<8x128xf32>
    %23 = arith.addf %18, %22 : vector<8x128xf32>
    %c0_20 = arith.constant 0 : index
    %c2 = arith.constant 2 : index
    %c0_21 = arith.constant 0 : index
    %c0_22 = arith.constant 0 : index
    %24 = vector.load %arg2[%c0_20, %c2, %c0_21, %c0_22] : memref<3x3x8x4xbf16, #tpu.memory_space<vmem>>, vector<1x1x8x4xbf16>
    %25 = vector.shape_cast %24 : vector<1x1x8x4xbf16> to vector<8x4xbf16>
    %26 = arith.truncf %14 : vector<4x128xf32> to vector<4x128xbf16>
    %cst_23 = arith.constant dense<0.000000e+00> : vector<8x128xf32>
    %27 = tpu.matmul %25, %26, %cst_23 {dimension_numbers = #tpu.dot_dimension_numbers<[1], [0], [0], [1], [0, 0, 1, 1], [], []>} : vector<8x4xbf16>, vector<4x128xbf16>, vector<8x128xf32> -> vector<8x128xf32>
    %28 = arith.addf %23, %27 : vector<8x128xf32>
    %c0_24 = arith.constant 0 : index
    %c0_25 = arith.constant 0 : index
    %c0_26 = arith.constant 0 : index
    %29 = vector.load %arg3[%c0_24, %c0_25, %c0_26] : memref<3x8x1xf32, #tpu.memory_space<vmem>>, vector<1x8x1xf32>
    %30 = vector.shape_cast %29 : vector<1x8x1xf32> to vector<8x1xf32>
    %31 = vector.broadcast %30 : vector<8x1xf32> to vector<8x128xf32>
    %32 = arith.addf %28, %31 : vector<8x128xf32>
    %33 = vector.extract_strided_slice %32 {offsets = [0, 0], sizes = [4, 128], strides = [1, 1]} : vector<8x128xf32> to vector<4x128xf32>
    %34 = math.tanh %33 : vector<4x128xf32>
    %35 = vector.extract_strided_slice %32 {offsets = [4, 0], sizes = [4, 128], strides = [1, 1]} : vector<8x128xf32> to vector<4x128xf32>
    %cst_27 = arith.constant 5.000000e-01 : f32
    %36 = vector.broadcast %cst_27 : f32 to vector<4x128xf32>
    %37 = arith.mulf %36, %35 : vector<4x128xf32>
    %38 = math.tanh %37 : vector<4x128xf32>
    %cst_28 = arith.constant 5.000000e-01 : f32
    %39 = vector.broadcast %cst_28 : f32 to vector<4x128xf32>
    %40 = arith.mulf %39, %38 : vector<4x128xf32>
    %cst_29 = arith.constant 5.000000e-01 : f32
    %41 = vector.broadcast %cst_29 : f32 to vector<4x128xf32>
    %42 = arith.addf %41, %40 : vector<4x128xf32>
    %43 = arith.mulf %34, %42 : vector<4x128xf32>
    %c0_30 = arith.constant 0 : index
    %c0_31 = arith.constant 0 : index
    %c0_32 = arith.constant 0 : index
    %44 = vector.load %arg4[%c0_30, %c0_31, %c0_32] : memref<3x4x4xbf16, #tpu.memory_space<vmem>>, vector<1x4x4xbf16>
    %45 = vector.shape_cast %44 : vector<1x4x4xbf16> to vector<4x4xbf16>
    %46 = arith.truncf %43 : vector<4x128xf32> to vector<4x128xbf16>
    %cst_33 = arith.constant dense<0.000000e+00> : vector<4x128xf32>
    %47 = tpu.matmul %45, %46, %cst_33 {dimension_numbers = #tpu.dot_dimension_numbers<[1], [0], [0], [1], [0, 0, 1, 1], [], []>} : vector<4x4xbf16>, vector<4x128xbf16>, vector<4x128xf32> -> vector<4x128xf32>
    %c0_34 = arith.constant 0 : index
    %c0_35 = arith.constant 0 : index
    %c0_36 = arith.constant 0 : index
    %48 = vector.load %arg5[%c0_34, %c0_35, %c0_36] : memref<3x4x1xf32, #tpu.memory_space<vmem>>, vector<1x4x1xf32>
    %49 = vector.shape_cast %48 : vector<1x4x1xf32> to vector<4x1xf32>
    %50 = vector.broadcast %49 : vector<4x1xf32> to vector<4x128xf32>
    %51 = arith.addf %47, %50 : vector<4x128xf32>
    %52 = vector.broadcast %11 : vector<1x128xf32> to vector<4x128xf32>
    %53 = arith.mulf %51, %52 : vector<4x128xf32>
    %54 = arith.addf %12, %53 : vector<4x128xf32>
    %c0_37 = arith.constant 0 : index
    %c128_38 = arith.constant 128 : index
    %55 = vector.load %arg7[%c0_37, %c128_38] : memref<4x384xf32, #tpu.memory_space<vmem>>, vector<4x128xf32>
    tpu.vector_store %arg7[%c0_37, %c128_38], %54 {strides = array<i32>} : memref<4x384xf32, #tpu.memory_space<vmem>>, vector<4x128xf32>,
    %c0_39 = arith.constant 0 : index
    %c0_40 = arith.constant 0 : index
    %c0_41 = arith.constant 0 : index
    %c0_42 = arith.constant 0 : index
    %56 = vector.load %arg6[%c0_39, %c0_40, %c0_41, %c0_42] : memref<3x1x4x128xf32, #tpu.memory_space<vmem>>, vector<1x1x4x128xf32>
    %57 = vector.shape_cast %56 : vector<1x1x4x128xf32> to vector<4x128xf32>
    %58 = vector.shape_cast %54 : vector<4x128xf32> to vector<1x1x4x128xf32>
    tpu.vector_store %arg6[%c0_39, %c0_40, %c0_41, %c0_42], %58 {strides = array<i32>} : memref<3x1x4x128xf32, #tpu.memory_space<vmem>>, vector<1x1x4x128xf32>,
    %c0_43 = arith.constant 0 : index
    %c128_44 = arith.constant 128 : index
    %59 = vector.load %arg7[%c0_43, %c128_44] : memref<4x384xf32, #tpu.memory_space<vmem>>, vector<4x128xf32>
    %c0_45 = arith.constant 0 : index
    %c126 = arith.constant 126 : index
    %60 = vector.load %arg7[%c0_45, %c126] : memref<4x384xf32, #tpu.memory_space<vmem>>, vector<4x128xf32>
    %c0_46 = arith.constant 0 : index
    %c130 = arith.constant 130 : index
    %61 = vector.load %arg7[%c0_46, %c130] : memref<4x384xf32, #tpu.memory_space<vmem>>, vector<4x128xf32>
    %c1_47 = arith.constant 1 : index
    %c0_48 = arith.constant 0 : index
    %c0_49 = arith.constant 0 : index
    %c0_50 = arith.constant 0 : index
    %62 = vector.load %arg2[%c1_47, %c0_48, %c0_49, %c0_50] : memref<3x3x8x4xbf16, #tpu.memory_space<vmem>>, vector<1x1x8x4xbf16>
    %63 = vector.shape_cast %62 : vector<1x1x8x4xbf16> to vector<8x4xbf16>
    %64 = arith.truncf %60 : vector<4x128xf32> to vector<4x128xbf16>
    %cst_51 = arith.constant dense<0.000000e+00> : vector<8x128xf32>
    %65 = tpu.matmul %63, %64, %cst_51 {dimension_numbers = #tpu.dot_dimension_numbers<[1], [0], [0], [1], [0, 0, 1, 1], [], []>} : vector<8x4xbf16>, vector<4x128xbf16>, vector<8x128xf32> -> vector<8x128xf32>
    %c1_52 = arith.constant 1 : index
    %c1_53 = arith.constant 1 : index
    %c0_54 = arith.constant 0 : index
    %c0_55 = arith.constant 0 : index
    %66 = vector.load %arg2[%c1_52, %c1_53, %c0_54, %c0_55] : memref<3x3x8x4xbf16, #tpu.memory_space<vmem>>, vector<1x1x8x4xbf16>
    %67 = vector.shape_cast %66 : vector<1x1x8x4xbf16> to vector<8x4xbf16>
    %68 = arith.truncf %59 : vector<4x128xf32> to vector<4x128xbf16>
    %cst_56 = arith.constant dense<0.000000e+00> : vector<8x128xf32>
    %69 = tpu.matmul %67, %68, %cst_56 {dimension_numbers = #tpu.dot_dimension_numbers<[1], [0], [0], [1], [0, 0, 1, 1], [], []>} : vector<8x4xbf16>, vector<4x128xbf16>, vector<8x128xf32> -> vector<8x128xf32>
    %70 = arith.addf %65, %69 : vector<8x128xf32>
    %c1_57 = arith.constant 1 : index
    %c2_58 = arith.constant 2 : index
    %c0_59 = arith.constant 0 : index
    %c0_60 = arith.constant 0 : index
    %71 = vector.load %arg2[%c1_57, %c2_58, %c0_59, %c0_60] : memref<3x3x8x4xbf16, #tpu.memory_space<vmem>>, vector<1x1x8x4xbf16>
    %72 = vector.shape_cast %71 : vector<1x1x8x4xbf16> to vector<8x4xbf16>
    %73 = arith.truncf %61 : vector<4x128xf32> to vector<4x128xbf16>
    %cst_61 = arith.constant dense<0.000000e+00> : vector<8x128xf32>
    %74 = tpu.matmul %72, %73, %cst_61 {dimension_numbers = #tpu.dot_dimension_numbers<[1], [0], [0], [1], [0, 0, 1, 1], [], []>} : vector<8x4xbf16>, vector<4x128xbf16>, vector<8x128xf32> -> vector<8x128xf32>
    %75 = arith.addf %70, %74 : vector<8x128xf32>
    %c1_62 = arith.constant 1 : index
    %c0_63 = arith.constant 0 : index
    %c0_64 = arith.constant 0 : index
    %76 = vector.load %arg3[%c1_62, %c0_63, %c0_64] : memref<3x8x1xf32, #tpu.memory_space<vmem>>, vector<1x8x1xf32>
    %77 = vector.shape_cast %76 : vector<1x8x1xf32> to vector<8x1xf32>
    %78 = vector.broadcast %77 : vector<8x1xf32> to vector<8x128xf32>
    %79 = arith.addf %75, %78 : vector<8x128xf32>
    %80 = vector.extract_strided_slice %79 {offsets = [0, 0], sizes = [4, 128], strides = [1, 1]} : vector<8x128xf32> to vector<4x128xf32>
    %81 = math.tanh %80 : vector<4x128xf32>
    %82 = vector.extract_strided_slice %79 {offsets = [4, 0], sizes = [4, 128], strides = [1, 1]} : vector<8x128xf32> to vector<4x128xf32>
    %cst_65 = arith.constant 5.000000e-01 : f32
    %83 = vector.broadcast %cst_65 : f32 to vector<4x128xf32>
    %84 = arith.mulf %83, %82 : vector<4x128xf32>
    %85 = math.tanh %84 : vector<4x128xf32>
    %cst_66 = arith.constant 5.000000e-01 : f32
    %86 = vector.broadcast %cst_66 : f32 to vector<4x128xf32>
    %87 = arith.mulf %86, %85 : vector<4x128xf32>
    %cst_67 = arith.constant 5.000000e-01 : f32
    %88 = vector.broadcast %cst_67 : f32 to vector<4x128xf32>
    %89 = arith.addf %88, %87 : vector<4x128xf32>
    %90 = arith.mulf %81, %89 : vector<4x128xf32>
    %c1_68 = arith.constant 1 : index
    %c0_69 = arith.constant 0 : index
    %c0_70 = arith.constant 0 : index
    %91 = vector.load %arg4[%c1_68, %c0_69, %c0_70] : memref<3x4x4xbf16, #tpu.memory_space<vmem>>, vector<1x4x4xbf16>
    %92 = vector.shape_cast %91 : vector<1x4x4xbf16> to vector<4x4xbf16>
    %93 = arith.truncf %90 : vector<4x128xf32> to vector<4x128xbf16>
    %cst_71 = arith.constant dense<0.000000e+00> : vector<4x128xf32>
    %94 = tpu.matmul %92, %93, %cst_71 {dimension_numbers = #tpu.dot_dimension_numbers<[1], [0], [0], [1], [0, 0, 1, 1], [], []>} : vector<4x4xbf16>, vector<4x128xbf16>, vector<4x128xf32> -> vector<4x128xf32>
    %c1_72 = arith.constant 1 : index
    %c0_73 = arith.constant 0 : index
    %c0_74 = arith.constant 0 : index
    %95 = vector.load %arg5[%c1_72, %c0_73, %c0_74] : memref<3x4x1xf32, #tpu.memory_space<vmem>>, vector<1x4x1xf32>
    %96 = vector.shape_cast %95 : vector<1x4x1xf32> to vector<4x1xf32>
    %97 = vector.broadcast %96 : vector<4x1xf32> to vector<4x128xf32>
    %98 = arith.addf %94, %97 : vector<4x128xf32>
    %99 = vector.broadcast %11 : vector<1x128xf32> to vector<4x128xf32>
    %100 = arith.mulf %98, %99 : vector<4x128xf32>
    %101 = arith.addf %59, %100 : vector<4x128xf32>
    %c0_75 = arith.constant 0 : index
    %c128_76 = arith.constant 128 : index
    %102 = vector.load %arg7[%c0_75, %c128_76] : memref<4x384xf32, #tpu.memory_space<vmem>>, vector<4x128xf32>
    tpu.vector_store %arg7[%c0_75, %c128_76], %101 {strides = array<i32>} : memref<4x384xf32, #tpu.memory_space<vmem>>, vector<4x128xf32>,
    %c1_77 = arith.constant 1 : index
    %c0_78 = arith.constant 0 : index
    %c0_79 = arith.constant 0 : index
    %c0_80 = arith.constant 0 : index
    %103 = vector.load %arg6[%c1_77, %c0_78, %c0_79, %c0_80] : memref<3x1x4x128xf32, #tpu.memory_space<vmem>>, vector<1x1x4x128xf32>
    %104 = vector.shape_cast %103 : vector<1x1x4x128xf32> to vector<4x128xf32>
    %105 = vector.shape_cast %101 : vector<4x128xf32> to vector<1x1x4x128xf32>
    tpu.vector_store %arg6[%c1_77, %c0_78, %c0_79, %c0_80], %105 {strides = array<i32>} : memref<3x1x4x128xf32, #tpu.memory_space<vmem>>, vector<1x1x4x128xf32>,
    %c0_81 = arith.constant 0 : index
    %c128_82 = arith.constant 128 : index
    %106 = vector.load %arg7[%c0_81, %c128_82] : memref<4x384xf32, #tpu.memory_space<vmem>>, vector<4x128xf32>
    %c0_83 = arith.constant 0 : index
    %c124 = arith.constant 124 : index
    %107 = vector.load %arg7[%c0_83, %c124] : memref<4x384xf32, #tpu.memory_space<vmem>>, vector<4x128xf32>
    %c0_84 = arith.constant 0 : index
    %c132 = arith.constant 132 : index
    %108 = vector.load %arg7[%c0_84, %c132] : memref<4x384xf32, #tpu.memory_space<vmem>>, vector<4x128xf32>
    %c2_85 = arith.constant 2 : index
    %c0_86 = arith.constant 0 : index
    %c0_87 = arith.constant 0 : index
    %c0_88 = arith.constant 0 : index
    %109 = vector.load %arg2[%c2_85, %c0_86, %c0_87, %c0_88] : memref<3x3x8x4xbf16, #tpu.memory_space<vmem>>, vector<1x1x8x4xbf16>
    %110 = vector.shape_cast %109 : vector<1x1x8x4xbf16> to vector<8x4xbf16>
    %111 = arith.truncf %107 : vector<4x128xf32> to vector<4x128xbf16>
    %cst_89 = arith.constant dense<0.000000e+00> : vector<8x128xf32>
    %112 = tpu.matmul %110, %111, %cst_89 {dimension_numbers = #tpu.dot_dimension_numbers<[1], [0], [0], [1], [0, 0, 1, 1], [], []>} : vector<8x4xbf16>, vector<4x128xbf16>, vector<8x128xf32> -> vector<8x128xf32>
    %c2_90 = arith.constant 2 : index
    %c1_91 = arith.constant 1 : index
    %c0_92 = arith.constant 0 : index
    %c0_93 = arith.constant 0 : index
    %113 = vector.load %arg2[%c2_90, %c1_91, %c0_92, %c0_93] : memref<3x3x8x4xbf16, #tpu.memory_space<vmem>>, vector<1x1x8x4xbf16>
    %114 = vector.shape_cast %113 : vector<1x1x8x4xbf16> to vector<8x4xbf16>
    %115 = arith.truncf %106 : vector<4x128xf32> to vector<4x128xbf16>
    %cst_94 = arith.constant dense<0.000000e+00> : vector<8x128xf32>
    %116 = tpu.matmul %114, %115, %cst_94 {dimension_numbers = #tpu.dot_dimension_numbers<[1], [0], [0], [1], [0, 0, 1, 1], [], []>} : vector<8x4xbf16>, vector<4x128xbf16>, vector<8x128xf32> -> vector<8x128xf32>
    %117 = arith.addf %112, %116 : vector<8x128xf32>
    %c2_95 = arith.constant 2 : index
    %c2_96 = arith.constant 2 : index
    %c0_97 = arith.constant 0 : index
    %c0_98 = arith.constant 0 : index
    %118 = vector.load %arg2[%c2_95, %c2_96, %c0_97, %c0_98] : memref<3x3x8x4xbf16, #tpu.memory_space<vmem>>, vector<1x1x8x4xbf16>
    %119 = vector.shape_cast %118 : vector<1x1x8x4xbf16> to vector<8x4xbf16>
    %120 = arith.truncf %108 : vector<4x128xf32> to vector<4x128xbf16>
    %cst_99 = arith.constant dense<0.000000e+00> : vector<8x128xf32>
    %121 = tpu.matmul %119, %120, %cst_99 {dimension_numbers = #tpu.dot_dimension_numbers<[1], [0], [0], [1], [0, 0, 1, 1], [], []>} : vector<8x4xbf16>, vector<4x128xbf16>, vector<8x128xf32> -> vector<8x128xf32>
    %122 = arith.addf %117, %121 : vector<8x128xf32>
    %c2_100 = arith.constant 2 : index
    %c0_101 = arith.constant 0 : index
    %c0_102 = arith.constant 0 : index
    %123 = vector.load %arg3[%c2_100, %c0_101, %c0_102] : memref<3x8x1xf32, #tpu.memory_space<vmem>>, vector<1x8x1xf32>
    %124 = vector.shape_cast %123 : vector<1x8x1xf32> to vector<8x1xf32>
    %125 = vector.broadcast %124 : vector<8x1xf32> to vector<8x128xf32>
    %126 = arith.addf %122, %125 : vector<8x128xf32>
    %127 = vector.extract_strided_slice %126 {offsets = [0, 0], sizes = [4, 128], strides = [1, 1]} : vector<8x128xf32> to vector<4x128xf32>
    %128 = math.tanh %127 : vector<4x128xf32>
    %129 = vector.extract_strided_slice %126 {offsets = [4, 0], sizes = [4, 128], strides = [1, 1]} : vector<8x128xf32> to vector<4x128xf32>
    %cst_103 = arith.constant 5.000000e-01 : f32
    %130 = vector.broadcast %cst_103 : f32 to vector<4x128xf32>
    %131 = arith.mulf %130, %129 : vector<4x128xf32>
    %132 = math.tanh %131 : vector<4x128xf32>
    %cst_104 = arith.constant 5.000000e-01 : f32
    %133 = vector.broadcast %cst_104 : f32 to vector<4x128xf32>
    %134 = arith.mulf %133, %132 : vector<4x128xf32>
    %cst_105 = arith.constant 5.000000e-01 : f32
    %135 = vector.broadcast %cst_105 : f32 to vector<4x128xf32>
    %136 = arith.addf %135, %134 : vector<4x128xf32>
    %137 = arith.mulf %128, %136 : vector<4x128xf32>
    %c2_106 = arith.constant 2 : index
    %c0_107 = arith.constant 0 : index
    %c0_108 = arith.constant 0 : index
    %138 = vector.load %arg4[%c2_106, %c0_107, %c0_108] : memref<3x4x4xbf16, #tpu.memory_space<vmem>>, vector<1x4x4xbf16>
    %139 = vector.shape_cast %138 : vector<1x4x4xbf16> to vector<4x4xbf16>
    %140 = arith.truncf %137 : vector<4x128xf32> to vector<4x128xbf16>
    %cst_109 = arith.constant dense<0.000000e+00> : vector<4x128xf32>
    %141 = tpu.matmul %139, %140, %cst_109 {dimension_numbers = #tpu.dot_dimension_numbers<[1], [0], [0], [1], [0, 0, 1, 1], [], []>} : vector<4x4xbf16>, vector<4x128xbf16>, vector<4x128xf32> -> vector<4x128xf32>
    %c2_110 = arith.constant 2 : index
    %c0_111 = arith.constant 0 : index
    %c0_112 = arith.constant 0 : index
    %142 = vector.load %arg5[%c2_110, %c0_111, %c0_112] : memref<3x4x1xf32, #tpu.memory_space<vmem>>, vector<1x4x1xf32>
    %143 = vector.shape_cast %142 : vector<1x4x1xf32> to vector<4x1xf32>
    %144 = vector.broadcast %143 : vector<4x1xf32> to vector<4x128xf32>
    %145 = arith.addf %141, %144 : vector<4x128xf32>
    %146 = vector.broadcast %11 : vector<1x128xf32> to vector<4x128xf32>
    %147 = arith.mulf %145, %146 : vector<4x128xf32>
    %148 = arith.addf %106, %147 : vector<4x128xf32>
    %c0_113 = arith.constant 0 : index
    %c128_114 = arith.constant 128 : index
    %149 = vector.load %arg7[%c0_113, %c128_114] : memref<4x384xf32, #tpu.memory_space<vmem>>, vector<4x128xf32>
    tpu.vector_store %arg7[%c0_113, %c128_114], %148 {strides = array<i32>} : memref<4x384xf32, #tpu.memory_space<vmem>>, vector<4x128xf32>,
    %c2_115 = arith.constant 2 : index
    %c0_116 = arith.constant 0 : index
    %c0_117 = arith.constant 0 : index
    %c0_118 = arith.constant 0 : index
    %150 = vector.load %arg6[%c2_115, %c0_116, %c0_117, %c0_118] : memref<3x1x4x128xf32, #tpu.memory_space<vmem>>, vector<1x1x4x128xf32>
    %151 = vector.shape_cast %150 : vector<1x1x4x128xf32> to vector<4x128xf32>
    %152 = vector.shape_cast %148 : vector<4x128xf32> to vector<1x1x4x128xf32>
    tpu.vector_store %arg6[%c2_115, %c0_116, %c0_117, %c0_118], %152 {strides = array<i32>} : memref<3x1x4x128xf32, #tpu.memory_space<vmem>>, vector<1x1x4x128xf32>,
    return
  }
  func.func @transform_0(%arg0: i32) -> (i32, i32, i32) {
    %c0_i32 = arith.constant 0 : i32
    %c0_i32_0 = arith.constant 0 : i32
    %c0_i32_1 = arith.constant 0 : i32
    return %arg0, %c0_i32, %c0_i32_0 : i32, i32, i32
  }
  func.func @transform_1(%arg0: i32) -> (i32, i32, i32, i32) {
    %c0_i32 = arith.constant 0 : i32
    %c0_i32_0 = arith.constant 0 : i32
    %c0_i32_1 = arith.constant 0 : i32
    %c0_i32_2 = arith.constant 0 : i32
    %c0_i32_3 = arith.constant 0 : i32
    return %c0_i32, %c0_i32_0, %c0_i32_1, %c0_i32_2 : i32, i32, i32, i32
  }
  func.func @transform_2(%arg0: i32) -> (i32, i32, i32) {
    %c0_i32 = arith.constant 0 : i32
    %c0_i32_0 = arith.constant 0 : i32
    %c0_i32_1 = arith.constant 0 : i32
    %c0_i32_2 = arith.constant 0 : i32
    return %c0_i32, %c0_i32_0, %c0_i32_1 : i32, i32, i32
  }
  func.func @transform_3(%arg0: i32) -> (i32, i32, i32) {
    %c0_i32 = arith.constant 0 : i32
    %c0_i32_0 = arith.constant 0 : i32
    %c0_i32_1 = arith.constant 0 : i32
    %c0_i32_2 = arith.constant 0 : i32
    return %c0_i32, %c0_i32_0, %c0_i32_1 : i32, i32, i32
  }
  func.func @transform_4(%arg0: i32) -> (i32, i32, i32) {
    %c0_i32 = arith.constant 0 : i32
    %c0_i32_0 = arith.constant 0 : i32
    %c0_i32_1 = arith.constant 0 : i32
    %c0_i32_2 = arith.constant 0 : i32
    return %c0_i32, %c0_i32_0, %c0_i32_1 : i32, i32, i32
  }
  func.func @transform_5(%arg0: i32) -> (i32, i32, i32, i32) {
    %c0_i32 = arith.constant 0 : i32
    %c0_i32_0 = arith.constant 0 : i32
    %c0_i32_1 = arith.constant 0 : i32
    %c0_i32_2 = arith.constant 0 : i32
    return %c0_i32, %arg0, %c0_i32_0, %c0_i32_1 : i32, i32, i32, i32
  }
}

</mosaic_0001>

<bundles_post_ra>
// kernel: wavenet_block.1
= control target key start
LH: loop header
LB: loop body
LE: loop exit
PB: predicated region body
PF: predicated region fallthrough
CT: control target
= control target key end

     0   :  { %s932_s18 = smov 0   ;;  %s934_s19 = smov 0   ;;  %s1093_s0 = inlined_call_operand.vmem [shape: f32[2,4,128], index: 0, kind: input, shape index: {}]   ;;  %s1094_s1 = inlined_call_operand.vmem [shape: bf16[3,3,8,4], index: 1, kind: input, shape index: {}]   ;;  %s1095_s2 = inlined_call_operand.vmem [shape: f32[3,8,1], index: 2, kind: input, shape index: {}]   ;;  %s1096_s3 = inlined_call_operand.vmem [shape: bf16[3,4,4], index: 3, kind: input, shape index: {}]   ;;  %s1097_s4 = inlined_call_operand.vmem [shape: f32[3,4,1], index: 4, kind: input, shape index: {}]   ;;  %s1098_s5 = inlined_call_operand.vmem [shape: f32[3,2,4,128], index: 5, kind: output, shape index: {}]  }
   0x1   :  { %s936_s20 = smov 0  }
   0x2 LB: > { %s945_s21 = sadd.s32 4294967295, %s892_s20   ;;  %s947_s22 = sadd.s32 1, %s892_s20   ;;  %s892_s20 = sphi %s936_s20, %s1102_s20   ;;  %s888_s19 = sphi %s934_s19, %s1101_s19   ;;  %s884_s18 = sphi %s932_s18, %s1100_s18  }
   0x3   : > { %s129_s23 = ssub.s32 %s892_s20, %s947_s22  ;;  %s132_s24 = sadd.s32 1, %s888_s19 }
   0x4   : > { %p130_p0 = scmp.eq.s32.totalorder %s129_s23, 0  ;;  %p142_p1 = scmp.ne.s32.totalorder %s888_s19, %s884_s18 }
   0x5   : > { %p143_p2 = scmp.eq.s32.totalorder %s945_s21, 1  ;;  %p788_p3 = scmp.ge.s32.totalorder %s892_s20, 1 }
   0x6   : > { %s955_s25 = scalar_select %p130_p0, %s888_s19, %s132_s24  }
   0x7   : > { %p957_p4 = por %p143_p2, %p142_p1  ;;  %p186_p5 = scmp.lt.s32.totalorder %s892_s20, 3 }
   0x9   : > { %p187_p6 = pnand %p788_p3, %p186_p5 }
   0xa   : > { %p212_p7 = scmp.lt.s32.totalorder (!%p187_p6), %s945_s21, 1  ;;  %s895_s7 = smov (!%p187_p6), 1  }
   0xb   : > { %190 = sbr.rel (%p187_p6) target bundleno = 1378 (0x562), region = 40  ;;  %s896_s8 = smov (!%p187_p6), 127  }
   0xc   : > { %s900_s20 = smov (!%p187_p6), 4  }
  0x10   : > { %v894_v0 = vmov 0.0   ;;  %s213_s27 = scalar_select %p212_p7, %s945_s21, 1  ;;  %vm245_vm0 = vcmask 1041408   ;;  %v791_v15 = vld [vmem:[%s1094_s1 + $0x4] sm:$0xf]  ;;  %vm241_vm1 = vcmask 31744   ;;  %v221_v49 = vlaneseq }
  0x11   : > { %217 = vst [vmem:[#allocation2] sm:$0xf] %v894_v0  ;;  %v327_v16 = vld [vmem:[%s1095_s2] sm:$0xff]  ;;  %v897_v17 = vmov 0   ;;  %vm268_vm2 = vcmask 7168   ;;  %vm305_vm3 = vcmask 1039360  }
  0x12   : > { %218 = vst [vmem:[#allocation2 + $0x8] sm:$0xf] %v894_v0  ;;  %s789_s28 = sshll.u32 %s213_s27, 2  ;;  %855 = vset.pattern.permute.xlu2 %v897_v17  ;;  %856 = vset.pattern.permute.xlu1 %v897_v17  ;;  %v345_v18 = vld [vmem:[%s1097_s4] sm:$0xf]  ;;  %v222_v50 = vand.u32 127, %v221_v49 }
  0x13   : > { %s215_s6 = scalar_lea.vmem %s1093_s0, %s789_s28  ;;  %330 = vperm.xlu2 %855, %v327_v16   ;;  %857 = vset.pattern.permute.xlu0 %v897_v17  ;;  %v229_v24 = vld [vmem:[%s1094_s1] sm:$0xf]  ;;  %v794_v28 = vld [vmem:[%s1094_s1 + $0x8] sm:$0xf]  ;;  %s209_s27 = sand.u32 1, %s884_s18   ;;  %vm452_vm5 = vcmask 1031168  }
  0x14   : > { %v219_v1 = vld [vmem:[%s215_s6] sm:$0xf]  ;;  %vm223_vm4 = vcmp.lt.s32.totalorder %v222_v50, 16  ;;  %s822_s28 = smul.u32 12, %s209_s27  ;;  %s898_s18 = smov 2   ;;  %vm415_vm6 = vcmask 15360  }
  0x15   : > { %220 = vst [vmem:[#allocation2 + $0x4] sm:$0xf] %v219_v1  ;;  %v343_v48 = vld [vmem:[%s1096_s3] sm:$0x3]  ;;  %v1000_v52 = vsel %vm223_vm4, 1.0, %v894_v0  ;;  %s901_s27 = smov 124  }
  0x16   : > { %s1004_s29 = scalar_lea.vmem [#allocation3], %s822_s28  ;;  %vm603_vm7 = vcmask 1014784   ;;  %s819_s13 = sshll.u32 (%p957_p4), %s945_s21, 2 }
  0x17   : > { %s684_s16 = scalar_lea.vmem (%p957_p4), %s1098_s5, %s819_s13 }
  0x1b   : > { %348 = vperm.xlu2 %855, %v345_v18  }
  0x1c   : > { %v227_v2 = vld [vmem:[#allocation2] sm:$0xff] }
  0x1d   : > { %231 = vst [vmem:[#allocation1] ss:$2 sm:$0xff] %v227_v2  ;;  %v228_v3 = vld [vmem:[#allocation2 + $0x4] sm:$0xff] }
  0x1e   : > { %v968_v12 = vld [vmem:[#allocation2 + $0x4] sm:$0xf] }
  0x1f   : > { %v240_v13 = vpack.c.bf16 %v968_v12, %v968_v12 }
  0x21   : > { %v247_v14 = vsel %vm245_vm0, %v240_v13, 0 }
  0x22   : > { %256 = vmatpush.bf16.msra.mxu0 %v247_v14  ;;  %v801_v14 = vld [vmem:[%s1094_s1 + $0x14] sm:$0xf] }
  0x24   : > { %v232_v4 = vld.sshfl [vmem:[#allocation1] sm:$0xff pattern:$0x75316420]  ;;  %v233_v5 = vld.sshfl [vmem:[#allocation1 + $0x8] sm:$0xff pattern:$0x75316420] }
  0x25   : > { %v236_v6 = vpack.c.bf16 %v232_v4, %v232_v4  ;;  %292 = vst [vmem:[#allocation1] ss:$2 sm:$0xff] %v228_v3  ;;  %v237_v7 = vpack.c.bf16 %v233_v5, %v233_v5  ;;  %792 = vmatmul.msk.bf16.vlgmr.msra.gmra.mxu0 %vm241_vm1, %v791_v15 }
  0x27   : > { %264 = vrot.lane.b32.xlu1 %v236_v6, %s895_s7  ;;  %v805_v6 = vld [vmem:[%s1097_s4 + $0x4] sm:$0xf] }
  0x2c   : > { %v293_v8 = vld.sshfl [vmem:[#allocation1] sm:$0xff pattern:$0x75316420]  ;;  %v294_v10 = vld.sshfl [vmem:[#allocation1 + $0x8] sm:$0xff pattern:$0x75316420] }
  0x2d   : > { %v297_v9 = vpack.c.bf16 %v293_v8, %v293_v8  ;;  %v298_v11 = vpack.c.bf16 %v294_v10, %v294_v10  ;;  %v798_v8 = vld [vmem:[%s1094_s1 + $0x10] sm:$0xf] }
  0x2f   : > { %301 = vrot.lane.b32.xlu0 %v297_v9, %s896_s8  ;;  %266 = vrot.lane.b32.xlu1 %v237_v7, %s895_s7  ;;  %s899_s7 = smov 126   ;;  %v803_v9 = vld [vmem:[%s1095_s2 + $0x8] sm:$0xff] }
  0x37   : > { %303 = vrot.lane.b32.xlu0 %v298_v11, %s896_s8 }
  0x6d   : > { %v331_v36 = vpop.permute.xlu2 %330 }
  0x75   : > { %v349_v51 = vpop.permute.xlu2 %348 }
  0x99   : > { %v265_v19 = vpop.permute.xlu1 %264 }
  0xa1   : > { %v302_v20 = vpop.permute.xlu0 %301  ;;  %v267_v21 = vpop.permute.xlu1 %266 }
  0xa2   : > { %v269_v22 = vsel %vm268_vm2, %v265_v19, %v267_v21  ;;  %v258_v29 = vpop.f32.mrf.mxu0  ;;  %v797_v19 = vld [vmem:[%s1094_s1 + $0xc] sm:$0xf] }
  0xa3   : > { %v274_v23 = vsel %vm245_vm0, %v269_v22, 0 }
  0xa4   : > { %283 = vmatpush.bf16.msra.mxu1 %v274_v23 }
  0xa7   : > { %793 = vmatmul.msk.bf16.vlgmr.msra.gmra.mxu1 %vm241_vm1, %v229_v24 }
  0xa9   : > { %v304_v25 = vpop.permute.xlu0 %303 }
  0xaa   : > { %v306_v26 = vsel %vm305_vm3, %v302_v20, %v304_v25  ;;  %v260_v30 = vpop.f32.mrf.mxu0 }
  0xab   : > { %v311_v27 = vsel %vm245_vm0, %v306_v26, 0 }
  0xac   : > { %320 = vmatpush.bf16.msra.mxu2 %v311_v27 }
  0xaf   : > { %795 = vmatmul.msk.bf16.vlgmr.msra.gmra.mxu2 %vm241_vm1, %v794_v28 }
 0x124   : > { %v285_v31 = vpop.f32.mrf.mxu1 }
 0x125   : > { %v286_v33 = vadd.f32 %v285_v31, %v258_v29 }
 0x12c   : > { %v287_v32 = vpop.f32.mrf.mxu1 }
 0x132   : > { %v322_v34 = vpop.f32.mrf.mxu2 }
 0x133   : > { %v326_v35 = vadd.f32 %v322_v34, %v286_v33 }
 0x135   : > { %v333_v37 = vadd.f32 %v331_v36, %v326_v35 }
 0x137   : > { %v335_v38 = vmul.f32 0.5, %v333_v37 }
 0x139   : > { %858 = vtanh.f32 %v335_v38 }
 0x13a   : > { %v324_v39 = vpop.f32.mrf.mxu2  ;;  %860 = vtanh.f32 %v333_v37 }
 0x13b   : > { %v804_v39 = vld [vmem:[%s1096_s3 + $0x2] sm:$0x3] }
 0x13f   : > { %v859_v40 = vpop.eup %858 }
 0x140   : > { %v337_v41 = vmul.f32 0.5, %v859_v40  ;;  %v861_v44 = vpop.eup %860 }
 0x142   : > { %v338_v42 = vadd.f32 0.5, %v337_v41 }
 0x144   : > { %v340_v43 = vrot.slane %v338_v42, 4 }
 0x146   : > { %v342_v45 = vmul.f32 %v861_v44, %v340_v43 }
 0x148   : > { %v344_v46 = vpack.c.bf16 %v342_v45, %v342_v45 }
 0x14a   : > { %v355_v47 = vsel %vm245_vm0, %v344_v46, 0 }
 0x14b   : > { %364 = vmatpush.bf16.msra.mxu3 %v355_v47 }
 0x14e   : > { %796 = vmatmul.msk.bf16.vlgmr.msra.gmra.mxu3 %vm241_vm1, %v343_v48 }
 0x1d1   : > { %v366_v53 = vpop.f32.mrf.mxu3 }
 0x1d2   : > { %v367_v54 = vadd.f32 %v366_v53, %v349_v51 }
 0x1d4   : > { %v370_v55 = vmul.f32 %v1000_v52, %v367_v54 }
 0x1d6   : > { %v371_v56 = vadd.f32 %v370_v55, %v968_v12 }
 0x1d8   : > { %372 = vst [vmem:[#allocation2 + $0x4] sm:$0xf] %v371_v56 }
 0x1d9   : > { %373 = vst [vmem:[%s1004_s29] sm:$0xf] %v371_v56  ;;  %v368_v57 = vpop.f32.mrf.mxu3 }
 0x1df   : > { %v1007_v58 = vld [vmem:[#allocation2 + $0x4] sm:$0xf] }
 0x1e0   : > { %v375_v59 = vld [vmem:[#allocation2] sm:$0xff]  ;;  %v389_v60 = vpack.c.bf16 %v1007_v58, %v1007_v58 }
 0x1e1   : > { %380 = vst [vmem:[#allocation1] ss:$2 sm:$0xff] %v375_v59  ;;  %v376_v62 = vld [vmem:[#allocation2 + $0x4] sm:$0xff]  ;;  %v816_v59 = vld [vmem:[%s1097_s4 + $0x8] sm:$0xf] }
 0x1e2   : > { %v394_v61 = vsel %vm245_vm0, %v389_v60, 0  ;;  %v814_v60 = vld [vmem:[%s1095_s2 + $0x10] sm:$0xff] }
 0x1e3   : > { %403 = vmatpush.bf16.msrb.mxu0 %v394_v61 }
 0x1e6   : > { %799 = vmatmul.msk.bf16.vlgmr.msrb.gmra.mxu0 %vm241_vm1, %v798_v8  ;;  %v808_v8 = vld [vmem:[%s1094_s1 + $0x18] sm:$0xf] }
 0x1e8   : > { %v381_v63 = vld.sshfl [vmem:[#allocation1] sm:$0xff pattern:$0x75316420]  ;;  %v382_v0 = vld.sshfl [vmem:[#allocation1 + $0x8] sm:$0xff pattern:$0x75316420] }
 0x1e9   : > { %v385_v1 = vpack.c.bf16 %v381_v63, %v381_v63  ;;  %439 = vst [vmem:[#allocation1] ss:$2 sm:$0xff] %v376_v62  ;;  %v386_v7 = vpack.c.bf16 %v382_v0, %v382_v0  ;;  %v809_v62 = vld [vmem:[%s1094_s1 + $0x1c] sm:$0xf] }
 0x1eb   : > { %411 = vrot.lane.b32.xlu2 %v385_v1, %s898_s18 }
 0x1f0   : > { %v441_v2 = vld.sshfl [vmem:[#allocation1 + $0x8] sm:$0xff pattern:$0x75316420]  ;;  %v440_v3 = vld.sshfl [vmem:[#allocation1] sm:$0xff pattern:$0x75316420] }
 0x1f1   : > { %v445_v4 = vpack.c.bf16 %v441_v2, %v441_v2  ;;  %v444_v5 = vpack.c.bf16 %v440_v3, %v440_v3  ;;  %v812_v3 = vld [vmem:[%s1094_s1 + $0x20] sm:$0xf] }
 0x1f3   : > { %450 = vrot.lane.b32.xlu1 %v445_v4, %s899_s7  ;;  %448 = vrot.lane.b32.xlu0 %v444_v5, %s899_s7 }
 0x1f4   : > { %498 = vperm.xlu2 %855, %v805_v6  }
 0x1fb   : > { %413 = vrot.lane.b32.xlu0 %v386_v7, %s898_s18  ;;  %478 = vperm.xlu1 %856, %v803_v9  }
 0x245   : > { %v412_v15 = vpop.permute.xlu2 %411 }
 0x24e   : > { %v499_v40 = vpop.permute.xlu2 %498 }
 0x263   : > { %v405_v20 = vpop.f32.mrf.mxu0 }
 0x265   : > { %v451_v10 = vpop.permute.xlu1 %450  ;;  %v449_v11 = vpop.permute.xlu0 %448 }
 0x266   : > { %v453_v12 = vsel %vm452_vm5, %v449_v11, %v451_v10 }
 0x267   : > { %v458_v13 = vsel %vm245_vm0, %v453_v12, 0 }
 0x268   : > { %467 = vmatpush.bf16.msrb.mxu2 %v458_v13 }
 0x26b   : > { %802 = vmatmul.msk.bf16.vlgmr.msrb.gmra.mxu2 %vm241_vm1, %v801_v14  ;;  %v407_v21 = vpop.f32.mrf.mxu0 }
 0x26d   : > { %v414_v16 = vpop.permute.xlu0 %413  ;;  %v479_v25 = vpop.permute.xlu1 %478 }
 0x26e   : > { %v416_v17 = vsel %vm415_vm6, %v412_v15, %v414_v16 }
 0x26f   : > { %v421_v18 = vsel %vm245_vm0, %v416_v17, 0 }
 0x270   : > { %430 = vmatpush.bf16.msrb.mxu1 %v421_v18 }
 0x273   : > { %800 = vmatmul.msk.bf16.vlgmr.msrb.gmra.mxu1 %vm241_vm1, %v797_v19 }
 0x2ee   : > { %v469_v22 = vpop.f32.mrf.mxu2 }
 0x2f0   : > { %v432_v23 = vpop.f32.mrf.mxu1 }
 0x2f1   : > { %v433_v24 = vadd.f32 %v432_v23, %v405_v20 }
 0x2f3   : > { %v473_v26 = vadd.f32 %v469_v22, %v433_v24 }
 0x2f5   : > { %v481_v27 = vadd.f32 %v479_v25, %v473_v26 }
 0x2f6   : > { %v471_v28 = vpop.f32.mrf.mxu2 }
 0x2f7   : > { %v483_v29 = vmul.f32 0.5, %v481_v27  ;;  %v815_v28 = vld [vmem:[%s1096_s3 + $0x4] sm:$0x3] }
 0x2f8   : > { %v434_v30 = vpop.f32.mrf.mxu1 }
 0x2f9   : > { %862 = vtanh.f32 %v483_v29 }
 0x2fa   : > { %864 = vtanh.f32 %v481_v27 }
 0x2ff   : > { %v863_v31 = vpop.eup %862 }
 0x300   : > { %v485_v32 = vmul.f32 0.5, %v863_v31  ;;  %v865_v35 = vpop.eup %864 }
 0x302   : > { %v486_v33 = vadd.f32 0.5, %v485_v32 }
 0x304   : > { %v488_v34 = vrot.slane %v486_v33, 4 }
 0x306   : > { %v490_v36 = vmul.f32 %v865_v35, %v488_v34  ;;  %v701_v35 = vld [vmem:[%s1004_s29] sm:$0xf] (%p957_p4) }
 0x307   : > { %702 = vst [vmem:[%s684_s16] sm:$0xf] (%p957_p4), %v701_v35 }
 0x308   : > { %v493_v37 = vpack.c.bf16 %v490_v36, %v490_v36 }
 0x30a   : > { %v505_v38 = vsel %vm245_vm0, %v493_v37, 0 }
 0x30b   : > { %514 = vmatpush.bf16.msrb.mxu3 %v505_v38 }
 0x30e   : > { %806 = vmatmul.msk.bf16.vlgmr.msrb.gmra.mxu3 %vm241_vm1, %v804_v39 }
 0x391   : > { %v516_v41 = vpop.f32.mrf.mxu3 }
 0x392   : > { %v517_v42 = vadd.f32 %v516_v41, %v499_v40 }
 0x394   : > { %v520_v43 = vmul.f32 %v1000_v52, %v517_v42 }
 0x396   : > { %v521_v44 = vadd.f32 %v520_v43, %v1007_v58 }
 0x398   : > { %522 = vst [vmem:[#allocation2 + $0x4] sm:$0xf] %v521_v44 }
 0x399   : > { %807 = vst [vmem:[%s1004_s29 + $0x4] sm:$0xf] %v521_v44  ;;  %v518_v45 = vpop.f32.mrf.mxu3 }
 0x39f   : > { %v1040_v46 = vld [vmem:[#allocation2 + $0x4] sm:$0xf] }
 0x3a0   : > { %v526_v47 = vld [vmem:[#allocation2] sm:$0xff]  ;;  %v540_v48 = vpack.c.bf16 %v1040_v46, %v1040_v46  ;;  %v703_v36 = vld [vmem:[%s1004_s29 + $0x4] sm:$0xf] (%p957_p4) }
 0x3a1   : > { %531 = vst [vmem:[#allocation1] ss:$2 sm:$0xff] %v526_v47  ;;  %v527_v50 = vld [vmem:[#allocation2 + $0x4] sm:$0xff] }
 0x3a2   : > { %v545_v49 = vsel %vm245_vm0, %v540_v48, 0  ;;  %704 = vst [vmem:[%s684_s16 + $0x8] sm:$0xf] (%p957_p4), %v703_v36 }
 0x3a3   : > { %554 = vmatpush.bf16.msra.mxu0 %v545_v49 }
 0x3a6   : > { %810 = vmatmul.msk.bf16.vlgmr.msra.gmra.mxu0 %vm241_vm1, %v809_v62 }
 0x3a8   : > { %v532_v51 = vld.sshfl [vmem:[#allocation1] sm:$0xff pattern:$0x75316420]  ;;  %v533_v53 = vld.sshfl [vmem:[#allocation1 + $0x8] sm:$0xff pattern:$0x75316420] }
 0x3a9   : > { %v536_v54 = vpack.c.bf16 %v532_v51, %v532_v51  ;;  %590 = vst [vmem:[#allocation1] ss:$2 sm:$0xff] %v527_v50  ;;  %v537_v61 = vpack.c.bf16 %v533_v53, %v533_v53 }
 0x3ab   : > { %562 = vrot.lane.b32.xlu2 %v536_v54, %s900_s20 }
 0x3b0   : > { %v592_v55 = vld.sshfl [vmem:[#allocation1 + $0x8] sm:$0xff pattern:$0x75316420]  ;;  %v591_v56 = vld.sshfl [vmem:[#allocation1] sm:$0xff pattern:$0x75316420] }
 0x3b1   : > { %v596_v57 = vpack.c.bf16 %v592_v55, %v592_v55  ;;  %v595_v58 = vpack.c.bf16 %v591_v56, %v591_v56 }
 0x3b3   : > { %601 = vrot.lane.b32.xlu1 %v596_v57, %s901_s27  ;;  %599 = vrot.lane.b32.xlu0 %v595_v58, %s901_s27 }
 0x3b4   : > { %649 = vperm.xlu2 %855, %v816_v59  }
 0x3bb   : > { %629 = vperm.xlu1 %856, %v814_v60   ;;  %564 = vrot.lane.b32.xlu0 %v537_v61, %s900_s20 }
 0x405   : > { %v563_v4 = vpop.permute.xlu2 %562 }
 0x40e   : > { %v650_v29 = vpop.permute.xlu2 %649 }
 0x423   : > { %v556_v9 = vpop.f32.mrf.mxu0 }
 0x425   : > { %v602_v63 = vpop.permute.xlu1 %601  ;;  %v600_v0 = vpop.permute.xlu0 %599 }
 0x426   : > { %v604_v1 = vsel %vm603_vm7, %v600_v0, %v602_v63 }
 0x427   : > { %v609_v2 = vsel %vm245_vm0, %v604_v1, 0 }
 0x428   : > { %618 = vmatpush.bf16.msra.mxu2 %v609_v2 }
 0x42b   : > { %813 = vmatmul.msk.bf16.vlgmr.msra.gmra.mxu2 %vm241_vm1, %v812_v3  ;;  %v558_v10 = vpop.f32.mrf.mxu0 }
 0x42d   : > { %v565_v5 = vpop.permute.xlu0 %564  ;;  %v630_v15 = vpop.permute.xlu1 %629 }
 0x42e   : > { %v567_v6 = vsel %vm241_vm1, %v563_v4, %v565_v5 }
 0x42f   : > { %v572_v7 = vsel %vm245_vm0, %v567_v6, 0 }
 0x430   : > { %581 = vmatpush.bf16.msra.mxu1 %v572_v7 }
 0x433   : > { %811 = vmatmul.msk.bf16.vlgmr.msra.gmra.mxu1 %vm241_vm1, %v808_v8 }
 0x4ae   : > { %v620_v11 = vpop.f32.mrf.mxu2 }
 0x4b0   : > { %v583_v12 = vpop.f32.mrf.mxu1 }
 0x4b1   : > { %v584_v13 = vadd.f32 %v583_v12, %v556_v9 }
 0x4b3   : > { %v624_v14 = vadd.f32 %v620_v11, %v584_v13 }
 0x4b5   : > { %v632_v16 = vadd.f32 %v630_v15, %v624_v14 }
 0x4b6   : > { %v622_v17 = vpop.f32.mrf.mxu2 }
 0x4b7   : > { %v634_v18 = vmul.f32 0.5, %v632_v16 }
 0x4b8   : > { %v585_v19 = vpop.f32.mrf.mxu1 }
 0x4b9   : > { %866 = vtanh.f32 %v634_v18 }
 0x4ba   : > { %868 = vtanh.f32 %v632_v16 }
 0x4bf   : > { %v867_v20 = vpop.eup %866 }
 0x4c0   : > { %v636_v21 = vmul.f32 0.5, %v867_v20  ;;  %v869_v24 = vpop.eup %868 }
 0x4c2   : > { %v637_v22 = vadd.f32 0.5, %v636_v21 }
 0x4c4   : > { %v639_v23 = vrot.slane %v637_v22, 4 }
 0x4c6   : > { %v641_v25 = vmul.f32 %v869_v24, %v639_v23 }
 0x4c8   : > { %v644_v26 = vpack.c.bf16 %v641_v25, %v641_v25 }
 0x4ca   : > { %v656_v27 = vsel %vm245_vm0, %v644_v26, 0 }
 0x4cb   : > { %665 = vmatpush.bf16.msra.mxu3 %v656_v27 }
 0x4ce   : > { %817 = vmatmul.msk.bf16.vlgmr.msra.gmra.mxu3 %vm241_vm1, %v815_v28 }
 0x551   : > { %v667_v30 = vpop.f32.mrf.mxu3 }
 0x552   : > { %v668_v31 = vadd.f32 %v667_v30, %v650_v29 }
 0x554   : > { %v671_v32 = vmul.f32 %v1000_v52, %v668_v31 }
 0x555   : > { %682 = sbr.rel (!%p957_p4) target bundleno = 1378 (0x562), region = 44 }
 0x556   : > { %v672_v33 = vadd.f32 %v671_v32, %v1040_v46 }
 0x558   : > { %673 = vst [vmem:[#allocation2 + $0x4] sm:$0xf] %v672_v33 }
 0x559   : > { %818 = vst [vmem:[%s1004_s29 + $0x8] sm:$0xf] %v672_v33  ;;  %v669_v34 = vpop.f32.mrf.mxu3 }
 0x560   : > { %v705_v52 = vld [vmem:[%s1004_s29 + $0x8] sm:$0xf] }
 0x561   : > { %706 = vst [vmem:[%s684_s16 + $0x10] sm:$0xf] %v705_v52 }
 0x562 PF: > { %p12_p8 = scmp.ge.s32.totalorder %s947_s22, 4   ;;  %s1100_s18 = smov %s888_s19 }
 0x563   : > { %s1101_s19 = smov %s955_s25  ;;  %s1102_s20 = smov %s947_s22 }
 0x564   :  { %14 = sbr.rel (!%p12_p8) target bundleno = 2 (0x2), region = 127 }

</bundles_post_ra>
